<compile_context>
chip_gen: v6e
topology: v6e:2x2x1
jax: 0.10.0
libtpu: 0.0.40
codegen_flags: <defaults>
</compile_context>

<pallas_src>
import functools
import math

import jax
import jax.numpy as jnp
from jax.experimental import pallas as pl
from jax.experimental.pallas import tpu as pltpu


# --------------------------------------------------------------------------
# kernels
# --------------------------------------------------------------------------
def _packed_kernel(x_ref, bmat_ref, freq_ref, phase_ref, o_ref):
    # x_ref:     (TILE_R, KPAD)   f32  RPP positions per packed row (rest zero)
    # bmat_ref:  (KPAD, LANE_W)   f32  one-hot block-broadcast matrix (resident)
    # freq_ref:  (1, LANE_W)      f32  scale*[freqs|freqs] tiled RPP times (resident)
    # phase_ref: (1, LANE_W)      f32  [0...|pi/2...] tiled RPP times     (resident)
    # o_ref:     (TILE_R, LANE_W) f32  lane-dense (multiple-of-128) output tile
    xr = jnp.dot(x_ref[...], bmat_ref[...], preferred_element_type=jnp.float32)
    o_ref[...] = jnp.sin(xr * freq_ref[...] + phase_ref[...])


def _row_kernel(x_ref, freq_ref, phase_ref, o_ref):
    # Fallback path (size already a multiple of 128, or packing not worthwhile).
    # x_ref: (TILE_N, 1); freq/phase: (1, SIZE); o_ref: (TILE_N, SIZE)
    o_ref[...] = jnp.sin(x_ref[...] * freq_ref[...] + phase_ref[...])


# --------------------------------------------------------------------------
# wrapper
# --------------------------------------------------------------------------
def sinusoidal_embedding(x: jax.Array, size: int, scale: float = 1.0,
                         *, tile_rows=None) -> jax.Array:
    """Pallas equivalent of SinusoidalEmbedding(size, scale)(x)."""
    assert size % 2 == 0 and size >= 4, "size must be even and >= 4 (half_size >= 2)"
    orig_shape = x.shape
    x = x.reshape(-1).astype(jnp.float32)          # torch broadcasts over leading dims
    n = int(x.shape[0])
    half = size // 2

    # Hoisted tables (computed once, reused by every grid step). Scale is folded
    # into the frequencies so the kernel body is a single fused mul-add + sin.
    k = jnp.arange(half, dtype=jnp.float32)
    coef = jnp.log(jnp.float32(10000.0)) / jnp.float32(half - 1)
    freqs = jnp.exp(-coef * k) * jnp.float32(scale)                     # (half,)
    freq_full = jnp.concatenate([freqs, freqs])                         # (size,)
    phase_full = jnp.concatenate(
        [jnp.zeros((half,), jnp.float32),
         jnp.full((half,), jnp.pi / 2.0, dtype=jnp.float32)])           # (size,)

    # Lane-dense packing: RPP rows per lane-row so RPP*size is a multiple of 128.
    rpp = 128 // math.gcd(size, 128)
    lane_w = size * rpp
    use_packed = (rpp > 1) and (lane_w <= 4096)

    if use_packed:
        kpad = max(rpp, 8)                         # MXU K dim padded to >= 8 sublanes
        if tile_rows is None:
            budget = 4 * 1024 * 1024               # bytes per output buffer (v7x-safe)
            tile_rows = max(8, min(512, (budget // (lane_w * 4)) // 8 * 8))
        tile_rows = max(8, (int(tile_rows) // 8) * 8)
        rows_needed = pl.cdiv(n, rpp)
        tile_rows = min(tile_rows, pl.cdiv(rows_needed, 8) * 8)
        r_pad = pl.cdiv(rows_needed, tile_rows) * tile_rows
        n_pad = r_pad * rpp

        xp = jnp.pad(x, (0, n_pad - n)) if n_pad != n else x
        xp = xp.reshape(r_pad, rpp)
        if kpad != rpp:
            xp = jnp.pad(xp, ((0, 0), (0, kpad - rpp)))

        # bmat[g, g*size + j] = 1  -> broadcasts position g to its `size` lanes.
        bmat = jnp.repeat(jnp.eye(rpp, dtype=jnp.float32), size, axis=1)  # (rpp, lane_w)
        if kpad != rpp:
            bmat = jnp.pad(bmat, ((0, kpad - rpp), (0, 0)))               # (kpad, lane_w)

        freq_t = jnp.tile(freq_full, rpp).reshape(1, lane_w)
        phase_t = jnp.tile(phase_full, rpp).reshape(1, lane_w)

        out = pl.pallas_call(
            _packed_kernel,
            out_shape=jax.ShapeDtypeStruct((r_pad, lane_w), jnp.float32),
            grid=(r_pad // tile_rows,),
            in_specs=[
                pl.BlockSpec((tile_rows, kpad), lambda i: (i, 0)),   # positions
                pl.BlockSpec((kpad, lane_w), lambda i: (0, 0)),      # bmat: resident
                pl.BlockSpec((1, lane_w), lambda i: (0, 0)),         # freqs: resident
                pl.BlockSpec((1, lane_w), lambda i: (0, 0)),         # phase: resident
            ],
            out_specs=pl.BlockSpec((tile_rows, lane_w), lambda i: (i, 0)),
            compiler_params=pltpu.CompilerParams(
                dimension_semantics=("parallel",),   # v7x: shard rows across both TCs
            ),
        )(xp, bmat, freq_t, phase_t)
        out = out.reshape(n_pad, size)               # row-major contiguous => free reshape
        out = out[:n] if n_pad != n else out
        return out.reshape(*orig_shape, size)

    # ---- fallback path: size is already a lane multiple (or lane_w too big) ----
    if tile_rows is None:
        budget = 4 * 1024 * 1024
        tile_rows = max(8, min(1024, (budget // (size * 4)) // 8 * 8))
    tile_rows = max(8, (int(tile_rows) // 8) * 8)
    tile_rows = min(tile_rows, pl.cdiv(n, 8) * 8)
    n_pad = pl.cdiv(n, tile_rows) * tile_rows

    x2d = x.reshape(n, 1)
    if n_pad != n:
        x2d = jnp.pad(x2d, ((0, n_pad - n), (0, 0)))

    out = pl.pallas_call(
        _row_kernel,
        out_shape=jax.ShapeDtypeStruct((n_pad, size), jnp.float32),
        grid=(n_pad // tile_rows,),
        in_specs=[
            pl.BlockSpec((tile_rows, 1), lambda i: (i, 0)),          # positions
            pl.BlockSpec((1, size), lambda i: (0, 0)),               # freqs: resident
            pl.BlockSpec((1, size), lambda i: (0, 0)),               # phase: resident
        ],
        out_specs=pl.BlockSpec((tile_rows, size), lambda i: (i, 0)),
        compiler_params=pltpu.CompilerParams(
            dimension_semantics=("parallel",),
        ),
    )(x2d, freq_full.reshape(1, size), phase_full.reshape(1, size))
    out = out[:n] if n_pad != n else out
    return out.reshape(*orig_shape, size)


# --------------------------------------------------------------------------
# reference + smoke test
# --------------------------------------------------------------------------
def _reference(x, size, scale):
    x = x.astype(jnp.float32) * scale
    half = size // 2
    coef = jnp.log(jnp.float32(10000.0)) / jnp.float32(half - 1)
    freqs = jnp.exp(-coef * jnp.arange(half, dtype=jnp.float32))
    emb = x[..., None] * freqs
    return jnp.concatenate([jnp.sin(emb), jnp.cos(emb)], axis=-1)


if __name__ == "__main__":
    key = jax.random.PRNGKey(0)
    N, SIZE, SCALE = 50, 32, 1.0
    # deterministic "diffusion timestep"-like inputs
    x = jax.random.uniform(key, (N,), dtype=jnp.float32) * 100.0

    # main (packed, lane-dense) path: SIZE=32 -> 4 rows packed per 128-lane row
    out = sinusoidal_embedding(x, SIZE, SCALE)
    out = jax.block_until_ready(out)
    ref = _reference(x, SIZE, SCALE)
    assert out.shape == (N, SIZE)
    # cos(z) is computed as sin(z + pi/2); differences vs the reference are
    # limited to f32 argument-rounding (well below 1e-4 at these magnitudes).
    assert jnp.allclose(out, ref, atol=1e-4, rtol=1e-4)

    # fallback row-tile path: SIZE a multiple of 128 (already lane-dense)
    SIZE2 = 128
    out2 = jax.block_until_ready(sinusoidal_embedding(x, SIZE2, SCALE))
    ref2 = _reference(x, SIZE2, SCALE)
    assert out2.shape == (N, SIZE2)
    assert jnp.allclose(out2, ref2, atol=1e-4, rtol=1e-4)

    print("KERNEL_OK")
</pallas_src>

<mosaic_0001>
module attributes {stable_mosaic.version = 11 : i64} {
  func.func @_packed_kernel(%arg0: i32, %arg1: memref<16x8xf32, #tpu.memory_space<vmem>>, %arg2: memref<8x128xf32, #tpu.memory_space<vmem>>, %arg3: memref<1x128xf32, #tpu.memory_space<vmem>>, %arg4: memref<1x128xf32, #tpu.memory_space<vmem>>, %arg5: memref<16x128xf32, #tpu.memory_space<vmem>>) attributes {dimension_semantics = [#tpu.dimension_semantics<parallel>], iteration_bounds = array<i64: 1>, scalar_prefetch = 0 : i64, scratch_operands = 0 : i64, tpu.core_type = #tpu.core_type<tc>, window_params = [{transform_indices = @transform_0, window_bounds = array<i64: 16, 8>}, {pipeline_mode = #tpu.pipeline_mode<synchronous>, transform_indices = @transform_1, window_bounds = array<i64: 8, 128>}, {pipeline_mode = #tpu.pipeline_mode<synchronous>, transform_indices = @transform_2, window_bounds = array<i64: 1, 128>}, {pipeline_mode = #tpu.pipeline_mode<synchronous>, transform_indices = @transform_3, window_bounds = array<i64: 1, 128>}, {transform_indices = @transform_4, window_bounds = array<i64: 16, 128>}]} {
    %c0 = arith.constant 0 : index
    %c0_0 = arith.constant 0 : index
    %0 = vector.load %arg1[%c0, %c0_0] : memref<16x8xf32, #tpu.memory_space<vmem>>, vector<16x8xf32>
    %c0_1 = arith.constant 0 : index
    %c0_2 = arith.constant 0 : index
    %1 = vector.load %arg2[%c0_1, %c0_2] : memref<8x128xf32, #tpu.memory_space<vmem>>, vector<8x128xf32>
    %cst = arith.constant dense<0.000000e+00> : vector<16x128xf32>
    %2 = tpu.matmul %0, %1, %cst {dimension_numbers = #tpu.dot_dimension_numbers<[1], [0], [0], [1], [0, 0, 1, 1], [], []>} : vector<16x8xf32>, vector<8x128xf32>, vector<16x128xf32> -> vector<16x128xf32>
    %c0_3 = arith.constant 0 : index
    %c0_4 = arith.constant 0 : index
    %3 = vector.load %arg3[%c0_3, %c0_4] : memref<1x128xf32, #tpu.memory_space<vmem>>, vector<1x128xf32>
    %4 = vector.broadcast %3 : vector<1x128xf32> to vector<16x128xf32>
    %5 = arith.mulf %2, %4 : vector<16x128xf32>
    %c0_5 = arith.constant 0 : index
    %c0_6 = arith.constant 0 : index
    %6 = vector.load %arg4[%c0_5, %c0_6] : memref<1x128xf32, #tpu.memory_space<vmem>>, vector<1x128xf32>
    %7 = vector.broadcast %6 : vector<1x128xf32> to vector<16x128xf32>
    %8 = arith.addf %5, %7 : vector<16x128xf32>
    %9 = math.sin %8 : vector<16x128xf32>
    %c0_7 = arith.constant 0 : index
    %c0_8 = arith.constant 0 : index
    %10 = vector.load %arg5[%c0_7, %c0_8] : memref<16x128xf32, #tpu.memory_space<vmem>>, vector<16x128xf32>
    tpu.vector_store %arg5[%c0_7, %c0_8], %9 {strides = array<i32>} : memref<16x128xf32, #tpu.memory_space<vmem>>, vector<16x128xf32>,
    return
  }
  func.func @transform_0(%arg0: i32) -> (i32, i32) {
    %c0_i32 = arith.constant 0 : i32
    %c0_i32_0 = arith.constant 0 : i32
    return %arg0, %c0_i32 : i32, i32
  }
  func.func @transform_1(%arg0: i32) -> (i32, i32) {
    %c0_i32 = arith.constant 0 : i32
    %c0_i32_0 = arith.constant 0 : i32
    %c0_i32_1 = arith.constant 0 : i32
    return %c0_i32, %c0_i32_0 : i32, i32
  }
  func.func @transform_2(%arg0: i32) -> (i32, i32) {
    %c0_i32 = arith.constant 0 : i32
    %c0_i32_0 = arith.constant 0 : i32
    %c0_i32_1 = arith.constant 0 : i32
    return %c0_i32, %c0_i32_0 : i32, i32
  }
  func.func @transform_3(%arg0: i32) -> (i32, i32) {
    %c0_i32 = arith.constant 0 : i32
    %c0_i32_0 = arith.constant 0 : i32
    %c0_i32_1 = arith.constant 0 : i32
    return %c0_i32, %c0_i32_0 : i32, i32
  }
  func.func @transform_4(%arg0: i32) -> (i32, i32) {
    %c0_i32 = arith.constant 0 : i32
    %c0_i32_0 = arith.constant 0 : i32
    return %arg0, %c0_i32 : i32, i32
  }
}

</mosaic_0001>

<bundles_post_ra>
// kernel: tpu_custom_call.1
= control target key start
LH: loop header
LB: loop body
LE: loop exit
PB: predicated region body
PF: predicated region fallthrough
CT: control target
= control target key end

     0   :  { %vm21_vm0 = vcmask 64512   ;;  %s535_s0 = inlined_call_operand.vmem [shape: f32[16,8], index: 0, kind: input, shape index: {}]   ;;  %s536_s1 = inlined_call_operand.vmem [shape: f32[8,128], index: 1, kind: input, shape index: {}]   ;;  %s537_s2 = inlined_call_operand.vmem [shape: f32[1,128], index: 2, kind: input, shape index: {}]   ;;  %s538_s3 = inlined_call_operand.vmem [shape: f32[1,128], index: 3, kind: input, shape index: {}]   ;;  %s539_s4 = inlined_call_operand.hbm [shape: f32[16,128], index: 4, kind: output, shape index: {}]  }
   0x1   :  { %v20_v0 = vld [vmem:[%s536_s1] sm:$0xff]  ;;  %v19_v2 = vld [vmem:[%s535_s0 + $0x8] sm:$0xff] }
   0x2   :  { %v18_v1 = vld [vmem:[%s535_s0] sm:$0xff]  ;;  %362 = vmatprep.subr.mxu0 %v20_v0 }
   0x3   :  { %364 = vmatprep.mubr.msk.f32.mxu0 %vm21_vm0, %v18_v1 }
   0x4   :  { %9 = vsyncpa [#allocation3], 0  ;;  %363 = vmatpush3.msra.mxu0 %v20_v0  ;;  %v349_v3 = vld [vmem:[%s537_s2] ss:$0 sm:$0xff]  ;;  %v414_v29 = vmov 683565275  }
   0x5   :  { %365 = vmatmul.mubr.msk.f32.vlgmr.msra.gmra.mxu0 %vm21_vm0, %v19_v2  ;;  %v350_v5 = vld [vmem:[%s538_s3] ss:$0 sm:$0xff]  ;;  %v415_v32 = vmov 2475754826   ;;  %v416_v34 = vmov 2131351028  }
   0x6   :  { %v417_v36 = vmov 2102212464   ;;  %v418_v38 = vmov 920167782   ;;  %v419_v45 = vmov 1326507024  }
   0x7   :  { %s420_s0 = smov [#allocation2]  }
   0x8   :  { %s336_s2 = sshll.u32 %s420_s0, 4  ;;  %s337_s2 = int_to_ptr.vmem [resolvable:$true] %s336_s2 }
   0x9   :  { %s392_s3 = scalar_lea.vmem %s337_s2, 256  ;;  %p397_p1 = scmp.lt.s32.totalorder %s337_s2, %s337_s2 }
   0xa   :  { %p393_p0 = scmp.ne.s32.totalorder %s337_s2, %s392_s3  ;;  %p398_p2 = scmp.lt.s32.totalorder %s392_s3, %s392_s3 }
   0xc   :  { %p399_p3 = por %p398_p2, %p397_p1 }
   0xe   :  { %p400_p4 = pnand %p399_p3, %p393_p0 }
  0xc5   :  { %v366_v4 = vpop.f32.mrf.mxu0 }
  0xc6   :  { %v111_v6 = vmul.f32 %v366_v4, %v349_v3 }
  0xc7   :  { %v94_v7 = vpop.f32.mrf.mxu0 }
  0xc8   :  { %v463_v8 = vadd.f32 %v350_v5, %v111_v6  ;;  %v110_v9 = vmul.f32 %v349_v3, %v94_v7 }
  0xca   :  { %v225_v10 = vand.u32 2147483647, %v463_v8  ;;  %v228_v11 = vand.u32 2139095040, %v463_v8  ;;  %v467_v12 = vadd.f32 %v350_v5, %v110_v9  ;;  %vm227_vm15 = vcmp.lt.s32.totalorder %v463_v8, 0 }
  0xcc   :  { %v229_v13 = vshrl.u32 %v228_v11, 23  ;;  %v232_v14 = vand.u32 8388607, %v225_v10  ;;  %v124_v15 = vand.u32 2139095040, %v467_v12  ;;  %v121_v17 = vand.u32 2147483647, %v467_v12 }
  0xcd   :  { %vm517_vm0 = vcmp.le.f32.partialorder %v225_v10, 0.7853982 }
  0xce   :  { %v355_v16 = vadd.s32 4294967169, %v229_v13  ;;  %v125_v18 = vshrl.u32 %v124_v15, 23  ;;  %v233_v20 = vor.u32 8388608, %v232_v14  ;;  %v128_v22 = vand.u32 8388607, %v121_v17 }
  0xd0   :  { %v235_v19 = vadd.s32 1, %v355_v16  ;;  %v351_v21 = vadd.s32 4294967169, %v125_v18  ;;  %v475_v27 = vshll.u32 %v233_v20, 8  ;;  %v129_v31 = vor.u32 8388608, %v128_v22 }
  0xd2   :  { %vm236_vm1 = vcmp.gt.s32.totalorder %v235_v19, 0  ;;  %v131_v24 = vadd.s32 1, %v351_v21  ;;  %v169_v0 = vshll.u32 %v129_v31, 8 }
  0xd3   :  { %v237_v23 = vsel %vm236_vm1, %v235_v19, 0  ;;  %vm123_vm1 = vcmp.lt.s32.totalorder %v467_v12, 0 }
  0xd4   :  { %v238_v25 = vshrl.u32 %v237_v23, 5  ;;  %v239_v26 = vand.u32 31, %v237_v23  ;;  %vm132_vm2 = vcmp.gt.s32.totalorder %v131_v24, 0 }
  0xd5   :  { %v133_v50 = vsel %vm132_vm2, %v131_v24, 0  ;;  %vm122_vm2 = vcmp.le.f32.partialorder %v121_v17, 0.7853982 }
  0xd6   :  { %v240_v28 = vsub.s32 32, %v239_v26  ;;  %v242_v30 = vshll.u32 %v414_v29, %v239_v26  ;;  %v245_v33 = vshll.u32 %v415_v32, %v239_v26  ;;  %v248_v35 = vshll.u32 %v416_v34, %v239_v26 }
  0xd7   :  { %v251_v37 = vshll.u32 %v417_v36, %v239_v26  ;;  %v254_v39 = vshll.u32 %v418_v38, %v239_v26  ;;  %vm257_vm3 = vcmp.lt.s32.totalorder %v238_v25, 1  ;;  %vm259_vm4 = vcmp.lt.s32.totalorder %v238_v25, 3 }
  0xd8   :  { %v243_v40 = vshrl.u32 %v415_v32, %v240_v28  ;;  %v246_v41 = vshrl.u32 %v416_v34, %v240_v28  ;;  %v249_v42 = vshrl.u32 %v417_v36, %v240_v28  ;;  %v241_v43 = vshrl.u32 %v414_v29, %v240_v28 }
  0xd9   :  { %v252_v44 = vshrl.u32 %v418_v38, %v240_v28  ;;  %v255_v46 = vshrl.u32 %v419_v45, %v240_v28  ;;  %vm260_vm5 = vcmp.lt.s32.totalorder %v238_v25, 4  ;;  %v135_v53 = vand.u32 31, %v133_v50 }
  0xda   :  { %v244_v47 = vor.u32 %v243_v40, %v242_v30  ;;  %v247_v48 = vor.u32 %v246_v41, %v245_v33  ;;  %v250_v49 = vor.u32 %v249_v42, %v248_v35  ;;  %vm258_vm6 = vcmp.lt.s32.totalorder %v238_v25, 2 }
  0xdb   :  { %v253_v51 = vor.u32 %v252_v44, %v251_v37  ;;  %v256_v52 = vor.u32 %v255_v46, %v254_v39  ;;  %v136_v61 = vsub.s32 32, %v135_v53  ;;  %v134_v4 = vshrl.u32 %v133_v50, 5 }
  0xdc   :  { %v261_v54 = vsel %vm257_vm3, %v241_v43, %v244_v47  ;;  %v262_v55 = vsel %vm260_vm5, %v250_v49, 2102212464  ;;  %v265_v56 = vsel %vm257_vm3, %v244_v47, %v247_v48  ;;  %v269_v57 = vsel %vm257_vm3, %v247_v48, %v250_v49 }
  0xdd   :  { %v263_v58 = vsel %vm259_vm4, %v247_v48, %v262_v55  ;;  %v266_v59 = vsel %vm260_vm5, %v253_v51, 920167782  ;;  %v270_v60 = vsel %vm260_vm5, %v256_v52, 1326507024  ;;  %v138_v11 = vshll.u32 %v414_v29, %v135_v53 }
  0xde   :  { %v267_v62 = vsel %vm259_vm4, %v250_v49, %v266_v59  ;;  %v271_v63 = vsel %vm259_vm4, %v253_v51, %v270_v60  ;;  %v264_v1 = vsel %vm258_vm6, %v261_v54, %v263_v58  ;;  %v139_v13 = vshrl.u32 %v415_v32, %v136_v61 }
  0xdf   :  { %v268_v2 = vsel %vm258_vm6, %v265_v56, %v267_v62  ;;  %v272_v3 = vsel %vm258_vm6, %v269_v57, %v271_v63  ;;  %v141_v14 = vshll.u32 %v415_v32, %v135_v53  ;;  %v142_v15 = vshrl.u32 %v416_v34, %v136_v61 }
  0xe0   :  { %v487_v5 = vmul.u32.u64.low %v475_v27, %v272_v3  ;;  %v488_v6 = vmul.u32.u64.high %v475_v27, %v272_v3, %v487_v5  ;;  %v491_v7 = vmul.u32.u64.low %v475_v27, %v268_v2  ;;  %v492_v9 = vmul.u32.u64.high %v475_v27, %v268_v2, %v491_v7 }
  0xe1   :  { %v144_v16 = vshll.u32 %v416_v34, %v135_v53  ;;  %v145_v18 = vshrl.u32 %v417_v36, %v136_v61  ;;  %v147_v19 = vshll.u32 %v417_v36, %v135_v53  ;;  %v148_v20 = vshrl.u32 %v418_v38, %v136_v61 }
  0xe2   :  { %v140_v21 = vor.u32 %v139_v13, %v138_v11  ;;  %v143_v22 = vor.u32 %v142_v15, %v141_v14  ;;  %v150_v23 = vshll.u32 %v418_v38, %v135_v53  ;;  %v151_v24 = vshrl.u32 %v419_v45, %v136_v61 }
  0xe3   :  { %v280_v25 = vmul.u32 %v475_v27, %v264_v1  ;;  %vm282_vm7 = vc.u32 %v488_v6, %v491_v7  ;;  %v283_v26 = vadd.s32 1, %v492_v9  ;;  %v146_v28 = vor.u32 %v145_v18, %v144_v16 }
  0xe4   :  { %v137_v30 = vshrl.u32 %v414_v29, %v136_v61  ;;  %v149_v31 = vor.u32 %v148_v20, %v147_v19  ;;  %v152_v32 = vor.u32 %v151_v24, %v150_v23  ;;  %vm153_vm8 = vcmp.lt.s32.totalorder %v134_v4, 1 }
  0xe5   :  { %v284_v33 = vsel %vm282_vm7, %v283_v26, %v492_v9  ;;  %vm155_vm9 = vcmp.lt.s32.totalorder %v134_v4, 3  ;;  %vm156_vm10 = vcmp.lt.s32.totalorder %v134_v4, 4  ;;  %v161_v34 = vsel %vm153_vm8, %v140_v21, %v143_v22 }
  0xe6   :  { %v285_v35 = vadd.s32 %v284_v33, %v280_v25  ;;  %v158_v36 = vsel %vm156_vm10, %v146_v28, 2102212464  ;;  %v162_v37 = vsel %vm156_vm10, %v149_v31, 920167782  ;;  %v165_v27 = vsel %vm153_vm8, %v143_v22, %v146_v28 }
  0xe7   :  { %vm154_vm11 = vcmp.lt.s32.totalorder %v134_v4, 2  ;;  %v157_v38 = vsel %vm153_vm8, %v137_v30, %v140_v21  ;;  %v163_v39 = vsel %vm155_vm9, %v146_v28, %v162_v37  ;;  %v166_v40 = vsel %vm156_vm10, %v152_v32, 1326507024 }
  0xe8   :  { %v286_v41 = vadd.s32 536870912, %v285_v35  ;;  %v159_v42 = vsel %vm155_vm9, %v143_v22, %v158_v36  ;;  %v164_v43 = vsel %vm154_vm11, %v161_v34, %v163_v39  ;;  %v167_v29 = vsel %vm155_vm9, %v149_v31, %v166_v40 }
  0xe9   :  { %v168_v44 = vsel %vm154_vm11, %v165_v27, %v167_v29  ;;  %v502_v45 = vmul.u32.u64.low %v169_v0, %v164_v43  ;;  %v503_v46 = vmul.u32.u64.high %v169_v0, %v164_v43, %v502_v45  ;;  %v160_v50 = vsel %vm154_vm11, %v157_v38, %v159_v42 }
  0xea   :  { %v287_v47 = vshrl.u32 %v286_v41, 30  ;;  %v505_v48 = vmul.u32.u64.low %v169_v0, %v168_v44  ;;  %v506_v49 = vmul.u32.u64.high %v169_v0, %v168_v44, %v505_v48  ;;  %v176_v54 = vmul.u32 %v169_v0, %v160_v50 }
  0xeb   :  { %v179_v52 = vadd.s32 1, %v503_v46  ;;  %v281_v3 = vadd.s32 %v491_v7, %v488_v6  ;;  %vm317_vm6 = vweird.f32 %v463_v8  ;;  %vm213_vm10 = vweird.f32 %v467_v12 }
  0xec   :  { %v288_v51 = vshll.u32 %v287_v47, 30  ;;  %vm178_vm12 = vc.u32 %v506_v49, %v502_v45  ;;  %v177_v25 = vadd.s32 %v502_v45, %v506_v49  ;;  %v311_v32 = vsub.s32 4, %v287_v47 }
  0xed   :  { %v180_v55 = vsel %vm178_vm12, %v179_v52, %v503_v46 }
  0xee   :  { %v289_v53 = vsub.s32 %v285_v35, %v288_v51  ;;  %v181_v57 = vadd.s32 %v180_v55, %v176_v54  ;;  %v312_v38 = vsel %vm227_vm15, %v311_v32, %v287_v47 }
  0xef   :  { %v314_v10 = vsel %vm517_vm0, 0, %v312_v38 }
  0xf0   :  { %v291_v56 = vsub.s32 0, %v289_v53  ;;  %v182_v59 = vadd.s32 536870912, %v181_v57  ;;  %v318_v29 = vadd.s32 3, %v314_v10 }
  0xf2   :  { %v356_v58 = vmin.u32 %v291_v56, %v289_v53  ;;  %v183_v61 = vshrl.u32 %v182_v59, 30  ;;  %v319_v47 = vand.u32 3, %v318_v29 }
  0xf4   :  { %v293_v60 = vclz %v356_v58  ;;  %v184_v63 = vshll.u32 %v183_v61, 30  ;;  %v207_v43 = vsub.s32 4, %v183_v61  ;;  %vm324_vm3 = vcmp.eq.s32.totalorder %v319_v47, 2 }
  0xf5   :  { %vm321_vm4 = vcmp.eq.s32.totalorder %v319_v47, 0  ;;  %vm320_vm5 = vcmp.lt.s32.totalorder %v319_v47, 2 }
  0xf6   :  { %v357_v62 = vadd.s32 4294967294, %v293_v60  ;;  %v185_v1 = vsub.s32 %v181_v57, %v184_v63  ;;  %v208_v46 = vsel %vm123_vm1, %v207_v43, %v183_v61 }
  0xf7   :  { %v210_v50 = vsel %vm122_vm2, 0, %v208_v46 }
  0xf8   :  { %vm358_vm13 = vcmp.lt.s32.totalorder %v357_v62, 0  ;;  %v187_v5 = vsub.s32 0, %v185_v1  ;;  %v214_v54 = vadd.s32 3, %v210_v50 }
  0xf9   :  { %v296_v2 = vsel %vm358_vm13, 0, %v357_v62 }
  0xfa   :  { %v297_v4 = vsub.s32 32, %v296_v2  ;;  %v301_v0 = vsub.s32 4294967266, %v296_v2  ;;  %v298_v9 = vshll.u32 %v289_v53, %v296_v2  ;;  %v352_v14 = vmin.u32 %v187_v5, %v185_v1 }
  0xfb   :  { %v215_v57 = vand.u32 3, %v214_v54 }
  0xfc   :  { %v299_v11 = vshrl.u32 %v281_v3, %v297_v4  ;;  %v302_v13 = vadd.s32 127, %v301_v0  ;;  %v189_v18 = vclz %v352_v14 }
  0xfd   :  { %vm220_vm7 = vcmp.eq.s32.totalorder %v215_v57, 2  ;;  %vm217_vm8 = vcmp.eq.s32.totalorder %v215_v57, 0  ;;  %vm216_vm9 = vcmp.lt.s32.totalorder %v215_v57, 2 }
  0xfe   :  { %v300_v15 = vor.u32 %v299_v11, %v298_v9  ;;  %v303_v16 = vshll.u32 %v302_v13, 23  ;;  %v353_v20 = vadd.s32 4294967294, %v189_v18 }
 0x100   :  { %v304_v19 = vor.u32 4788187, %v303_v16  ;;  %v307_v22 = vcvt.s32.f32 %v300_v15  ;;  %vm354_vm14 = vcmp.lt.s32.totalorder %v353_v20, 0 }
 0x101   :  { %v192_v23 = vsel %vm354_vm14, 0, %v353_v20 }
 0x102   :  { %v305_v21 = vand.u32 2147483647, %v304_v19  ;;  %v193_v6 = vsub.s32 32, %v192_v23  ;;  %v197_v7 = vsub.s32 4294967266, %v192_v23  ;;  %v194_v28 = vshll.u32 %v185_v1, %v192_v23 }
 0x104   :  { %v308_v24 = vmul.f32 %v307_v22, %v305_v21  ;;  %v195_v30 = vshrl.u32 %v177_v25, %v193_v6  ;;  %v198_v31 = vadd.s32 127, %v197_v7 }
 0x106   :  { %v309_v26 = vxor.u32 2147483648, %v308_v24  ;;  %v196_v35 = vor.u32 %v195_v30, %v194_v28  ;;  %v199_v36 = vshll.u32 %v198_v31, 23 }
 0x108   :  { %v310_v34 = vsel %vm227_vm15, %v309_v26, %v308_v24  ;;  %v200_v27 = vor.u32 4788187, %v199_v36  ;;  %v203_v40 = vcvt.s32.f32 %v196_v35 }
 0x109   :  { %v313_v37 = vsel %vm517_vm0, %v463_v8, %v310_v34 }
 0x10a   :  { %384 = vcosq.f32 %v313_v37  ;;  %v201_v39 = vand.u32 2147483647, %v200_v27 }
 0x10b   :  { %386 = vsinq.f32 %v313_v37 }
 0x10c   :  { %v204_v41 = vmul.f32 %v203_v40, %v201_v39 }
 0x10e   :  { %v205_v42 = vxor.u32 2147483648, %v204_v41 }
 0x110   :  { %v206_v44 = vsel %vm123_vm1, %v205_v42, %v204_v41 }
 0x111   :  { %v209_v45 = vsel %vm122_vm2, %v467_v12, %v206_v44 }
 0x112   :  { %388 = vcosq.f32 %v209_v45 }
 0x113   :  { %390 = vsinq.f32 %v209_v45 }
 0x117   :  { %v385_v48 = vpop.eup %384 }
 0x118   :  { %v387_v49 = vpop.eup %386  ;;  %v325_v51 = vxor.u32 2147483648, %v385_v48 }
 0x119   :  { %v322_v52 = vxor.u32 2147483648, %v387_v49 }
 0x11a   :  { %v326_v53 = vsel %vm324_vm3, %v325_v51, %v387_v49 }
 0x11b   :  { %v323_v55 = vsel %vm321_vm4, %v385_v48, %v322_v52 }
 0x11c   :  { %v327_v17 = vsel %vm320_vm5, %v323_v55, %v326_v53 }
 0x11d   :  { %v328_v56 = vsel %vm317_vm6, nan, %v327_v17 }
 0x11e   :  { %330 = vst [vmem:[#allocation2 + $0x8] sm:$0xff] %v328_v56 }
 0x11f   :  { %v389_v58 = vpop.eup %388 }
 0x120   :  { %v391_v59 = vpop.eup %390  ;;  %v221_v60 = vxor.u32 2147483648, %v389_v58 }
 0x121   :  { %v218_v61 = vxor.u32 2147483648, %v391_v59 }
 0x122   :  { %v222_v62 = vsel %vm220_vm7, %v221_v60, %v391_v59 }
 0x123   :  { %v219_v63 = vsel %vm217_vm8, %v389_v58, %v218_v61 }
 0x124   :  { %v223_v1 = vsel %vm216_vm9, %v219_v63, %v222_v62 }
 0x125   :  { %v224_v8 = vsel %vm213_vm10, nan, %v223_v1 }
 0x126   :  { %329 = vst [vmem:[#allocation2] sm:$0xff] %v224_v8 }
 0x127   :  { %403 = shalt.err (!%p400_p4)
}
 0x128   :  { %s421_s24 = smov 128   ;;  %s422_s25 = smov 8  }
 0x129   :  { %342 = dma.vmem_to_hbm [thread:$0]  %s337_s2, 256, %s539_s4, [#allocation3], %s421_s24, %s421_s24, %s422_s25  }
 0x12a   :  { %412 = dma.done.wait [#allocation3], 256  }
 0x12b   :  { %413 = vsyncadd [#allocation3], 4294967040 }
 0x12c   :  { %346 = vsyncpa [#allocation3], 1 }

</bundles_post_ra>
